<compile_context>
chip_gen: v5e
topology: v5e:2x2
jax: 0.10.0
libtpu: 0.0.40
codegen_flags: <defaults>
</compile_context>

<pallas_src>
import functools
import math

import jax
import jax.numpy as jnp
from jax.experimental import pallas as pl
from jax.experimental.pallas import tpu as pltpu


def _round_up(n, m):
    return ((n + m - 1) // m) * m


# ---- shared-range-reduction sin/cos (f32) -----------------------------------
_TWO_OVER_PI = 0.6366197723675814
# pi/2 split into Cody-Waite pieces (2x the Cephes pi/4 split).
_PIO2_HI = 1.5703125
_PIO2_MED = 4.837512969970703125e-04
_PIO2_LO = 7.54978995489188e-08


def _sincos(x):
    """sin(x), cos(x) with one shared range reduction (f32, ~1e-7 abs error)."""
    k = jnp.floor(x * _TWO_OVER_PI + 0.5)          # nearest multiple of pi/2
    r = x - k * _PIO2_HI
    r = r - k * _PIO2_MED
    r = r - k * _PIO2_LO                           # r in ~[-pi/4, pi/4]
    z = r * r
    # Cephes sinf / cosf minimax polynomials on [-pi/4, pi/4].
    ps = (z * (-1.9515295891e-4) + 8.3321608736e-3) * z - 1.6666654611e-1
    sin_r = ps * z * r + r
    pc = (z * 2.443315711809948e-5 - 1.388731625493765e-3) * z + 4.166664568298827e-2
    cos_r = pc * (z * z) - 0.5 * z + 1.0
    # Quadrant selection: x = r + k*pi/2, q = k mod 4.
    q = k.astype(jnp.int32) & 3
    swap = (q & 1) == 1                            # q in {1, 3}: swap sin/cos
    sin_v = jnp.where(swap, cos_r, sin_r)
    cos_v = jnp.where(swap, sin_r, cos_r)
    sin_v = jnp.where((q & 2) == 2, -sin_v, sin_v)         # q in {2, 3}
    cos_v = jnp.where(((q + 1) & 2) == 2, -cos_v, cos_v)   # q in {1, 2}
    return sin_v, cos_v


# ---- kernel ------------------------------------------------------------------
def _sinusoidal_kernel(freqs_ref, x_ref, out_ref, *, half_dim, use_fast_sincos):
    # freqs_ref: (1, half)  f32, resident across the grid
    # x_ref:     (TB, 1)    f32 positions (batch on sublanes)
    # out_ref:   (TB, dim)  [sin | cos]
    emb = x_ref[...] * freqs_ref[...]              # (TB, half)
    if use_fast_sincos:
        sin_v, cos_v = _sincos(emb)
    else:
        sin_v, cos_v = jnp.sin(emb), jnp.cos(emb)
    sin_v = sin_v.astype(out_ref.dtype)
    cos_v = cos_v.astype(out_ref.dtype)
    if half_dim % 128 == 0:
        # Two lane-aligned full-width stores: no lane stitch needed.
        out_ref[:, :half_dim] = sin_v
        out_ref[:, half_dim:] = cos_v
    else:
        # Single lane-dense store (in-register concat).
        out_ref[...] = jnp.concatenate([sin_v, cos_v], axis=-1)


# ---- wrapper -----------------------------------------------------------------
def sinusoidal_pos_emb(
    x,
    dim,
    theta=10000.0,
    *,
    block_b=None,
    out_dtype=jnp.float32,
    use_fast_sincos=True,
    num_cores=2,                      # v7x megacore; harmless on v5e/v6e
    vmem_budget_bytes=10 * 1024 * 1024,
):
    """x: (B,) positions -> (B, dim) sinusoidal embedding."""
    assert dim % 2 == 0, "dim must be even"
    half_dim = dim // 2
    # Same hazard as the PyTorch original (half_dim - 1 == 0) -> guard.
    assert half_dim > 1, "dim must be >= 4 (half_dim - 1 would be zero)"
    B = x.shape[0]

    # Frequency table: computed once at trace time, resident across the grid.
    scale = math.log(theta) / (half_dim - 1)
    freqs = jnp.exp(
        jnp.arange(half_dim, dtype=jnp.float32) * (-scale)
    ).reshape(1, half_dim)

    # --- batch tile sizing ---
    # Pipelined (double-buffered) VMEM bytes per batch row:
    #   input  (tb, 1) f32 is lane-padded to 128 lanes -> 512 B/row/buffer
    #   output (tb, dim)                               -> itemsize*dim B/row/buffer
    out_itemsize = jnp.dtype(out_dtype).itemsize
    per_row = 2 * (512 + out_itemsize * dim)
    if block_b is None:
        tb = vmem_budget_bytes // per_row
        # >= num_cores grid steps so a v7x megacore splits the batch axis.
        tb = min(tb, _round_up(pl.cdiv(B, num_cores), 8))
    else:
        tb = block_b
    tb = min(tb, _round_up(B, 8))
    tb = max(8, (tb // 8) * 8)

    grid = pl.cdiv(B, tb)

    # Pad only the tiny 1-D input to grid*tb rows so every input-block read is
    # defined; output stays (B, dim) and Pallas masks the ragged last block on
    # writeback (no out[:B] copy, no garbage-row stores).
    b_in = grid * tb
    x2d = x.astype(jnp.float32).reshape(B, 1)
    if b_in != B:
        x2d = jnp.pad(x2d, ((0, b_in - B), (0, 0)))

    kernel = functools.partial(
        _sinusoidal_kernel, half_dim=half_dim, use_fast_sincos=use_fast_sincos
    )

    # ~30 VPU ops per emb element (range reduction + 2 polys + quadrant selects).
    flops = int(B) * int(half_dim) * 30
    bytes_accessed = 4 * (b_in + half_dim) + out_itemsize * B * dim

    return pl.pallas_call(
        kernel,
        out_shape=jax.ShapeDtypeStruct((B, dim), out_dtype),
        grid_spec=pltpu.PrefetchScalarGridSpec(
            num_scalar_prefetch=0,
            grid=(grid,),
            in_specs=[
                pl.BlockSpec((1, half_dim), lambda i: (0, 0)),   # freqs (resident)
                pl.BlockSpec((tb, 1), lambda i: (i, 0)),         # x
            ],
            out_specs=pl.BlockSpec((tb, dim), lambda i: (i, 0)),
        ),
        compiler_params=pltpu.CompilerParams(
            dimension_semantics=("parallel",),
        ),
        cost_estimate=pl.CostEstimate(
            flops=flops,
            transcendentals=0,
            bytes_accessed=int(bytes_accessed),
        ),
    )(freqs, x2d)


# ---- reference + test --------------------------------------------------------
def _reference(x, dim, theta=10000.0):
    half_dim = dim // 2
    scale = math.log(theta) / (half_dim - 1)
    freqs = jnp.exp(jnp.arange(half_dim, dtype=jnp.float32) * -scale)
    emb = x.astype(jnp.float32)[:, None] * freqs[None, :]
    return jnp.concatenate([jnp.sin(emb), jnp.cos(emb)], axis=-1)


if __name__ == "__main__":
    key = jax.random.PRNGKey(0)

    # Primary case (matches typical diffusion-timestep usage): B=8, dim=32.
    B, DIM = 8, 32
    x = jax.random.uniform(key, (B,), dtype=jnp.float32, minval=0.0, maxval=1000.0)
    out = jax.block_until_ready(sinusoidal_pos_emb(x, DIM))
    ref = _reference(x, DIM)
    assert out.shape == (B, DIM)
    assert jnp.allclose(out, ref, atol=5e-5, rtol=1e-5)

    # Ragged batch (not a multiple of 8 / tile): exercises masked last block.
    B2 = 13
    x2 = jax.random.uniform(
        jax.random.PRNGKey(1), (B2,), dtype=jnp.float32, minval=0.0, maxval=1000.0
    )
    out2 = jax.block_until_ready(sinusoidal_pos_emb(x2, DIM))
    assert out2.shape == (B2, DIM)
    assert jnp.allclose(out2, _reference(x2, DIM), atol=5e-5, rtol=1e-5)

    # dim multiple of 256 (lane-aligned split-store path) + multi-step grid
    # with a ragged last block.
    B3, DIM3 = 40, 256
    x3 = jax.random.uniform(
        jax.random.PRNGKey(2), (B3,), dtype=jnp.float32, minval=0.0, maxval=1000.0
    )
    out3 = jax.block_until_ready(sinusoidal_pos_emb(x3, DIM3, block_b=16))
    assert out3.shape == (B3, DIM3)
    assert jnp.allclose(out3, _reference(x3, DIM3), atol=5e-5, rtol=1e-5)

    print("KERNEL_OK")
</pallas_src>

<mosaic_0001>
module attributes {stable_mosaic.version = 11 : i64} {
  func.func @_sinusoidal_kernel(%arg0: i32, %arg1: memref<1x16xf32, #tpu.memory_space<vmem>>, %arg2: memref<8x1xf32, #tpu.memory_space<vmem>>, %arg3: memref<8x32xf32, #tpu.memory_space<vmem>>) attributes {dimension_semantics = [#tpu.dimension_semantics<parallel>], iteration_bounds = array<i64: 1>, scalar_prefetch = 0 : i64, scratch_operands = 0 : i64, tpu.core_type = #tpu.core_type<tc>, window_params = [{pipeline_mode = #tpu.pipeline_mode<synchronous>, transform_indices = @transform_0, window_bounds = array<i64: 1, 16>}, {transform_indices = @transform_1, window_bounds = array<i64: 8, 1>}, {transform_indices = @transform_2, window_bounds = array<i64: 8, 32>}]} {
    %c0 = arith.constant 0 : index
    %c0_0 = arith.constant 0 : index
    %0 = vector.load %arg2[%c0, %c0_0] : memref<8x1xf32, #tpu.memory_space<vmem>>, vector<8x1xf32>
    %c0_1 = arith.constant 0 : index
    %c0_2 = arith.constant 0 : index
    %1 = vector.load %arg1[%c0_1, %c0_2] : memref<1x16xf32, #tpu.memory_space<vmem>>, vector<1x16xf32>
    %2 = vector.broadcast %0 : vector<8x1xf32> to vector<8x16xf32>
    %3 = vector.broadcast %1 : vector<1x16xf32> to vector<8x16xf32>
    %4 = arith.mulf %2, %3 : vector<8x16xf32>
    %cst = arith.constant 0.636619746 : f32
    %5 = vector.broadcast %cst : f32 to vector<8x16xf32>
    %6 = arith.mulf %4, %5 : vector<8x16xf32>
    %cst_3 = arith.constant 5.000000e-01 : f32
    %7 = vector.broadcast %cst_3 : f32 to vector<8x16xf32>
    %8 = arith.addf %6, %7 : vector<8x16xf32>
    %9 = math.floor %8 : vector<8x16xf32>
    %cst_4 = arith.constant 1.5703125 : f32
    %10 = vector.broadcast %cst_4 : f32 to vector<8x16xf32>
    %11 = arith.mulf %9, %10 : vector<8x16xf32>
    %12 = arith.subf %4, %11 : vector<8x16xf32>
    %cst_5 = arith.constant 4.83751297E-4 : f32
    %13 = vector.broadcast %cst_5 : f32 to vector<8x16xf32>
    %14 = arith.mulf %9, %13 : vector<8x16xf32>
    %15 = arith.subf %12, %14 : vector<8x16xf32>
    %cst_6 = arith.constant 7.549790e-08 : f32
    %16 = vector.broadcast %cst_6 : f32 to vector<8x16xf32>
    %17 = arith.mulf %9, %16 : vector<8x16xf32>
    %18 = arith.subf %15, %17 : vector<8x16xf32>
    %19 = arith.mulf %18, %18 : vector<8x16xf32>
    %cst_7 = arith.constant -1.95152956E-4 : f32
    %20 = vector.broadcast %cst_7 : f32 to vector<8x16xf32>
    %21 = arith.mulf %19, %20 : vector<8x16xf32>
    %cst_8 = arith.constant 0.00833216123 : f32
    %22 = vector.broadcast %cst_8 : f32 to vector<8x16xf32>
    %23 = arith.addf %21, %22 : vector<8x16xf32>
    %24 = arith.mulf %23, %19 : vector<8x16xf32>
    %cst_9 = arith.constant 0.166666552 : f32
    %25 = vector.broadcast %cst_9 : f32 to vector<8x16xf32>
    %26 = arith.subf %24, %25 : vector<8x16xf32>
    %27 = arith.mulf %26, %19 : vector<8x16xf32>
    %28 = arith.mulf %27, %18 : vector<8x16xf32>
    %29 = arith.addf %28, %18 : vector<8x16xf32>
    %cst_10 = arith.constant 2.44331568E-5 : f32
    %30 = vector.broadcast %cst_10 : f32 to vector<8x16xf32>
    %31 = arith.mulf %19, %30 : vector<8x16xf32>
    %cst_11 = arith.constant 0.00138873165 : f32
    %32 = vector.broadcast %cst_11 : f32 to vector<8x16xf32>
    %33 = arith.subf %31, %32 : vector<8x16xf32>
    %34 = arith.mulf %33, %19 : vector<8x16xf32>
    %cst_12 = arith.constant 0.0416666456 : f32
    %35 = vector.broadcast %cst_12 : f32 to vector<8x16xf32>
    %36 = arith.addf %34, %35 : vector<8x16xf32>
    %37 = arith.mulf %19, %19 : vector<8x16xf32>
    %38 = arith.mulf %36, %37 : vector<8x16xf32>
    %cst_13 = arith.constant 5.000000e-01 : f32
    %39 = vector.broadcast %cst_13 : f32 to vector<8x16xf32>
    %40 = arith.mulf %39, %19 : vector<8x16xf32>
    %41 = arith.subf %38, %40 : vector<8x16xf32>
    %cst_14 = arith.constant 1.000000e+00 : f32
    %42 = vector.broadcast %cst_14 : f32 to vector<8x16xf32>
    %43 = arith.addf %41, %42 : vector<8x16xf32>
    %44 = arith.fptosi %9 : vector<8x16xf32> to vector<8x16xi32>
    %c3_i32 = arith.constant 3 : i32
    %45 = vector.broadcast %c3_i32 : i32 to vector<8x16xi32>
    %46 = arith.andi %44, %45 : vector<8x16xi32>
    %c1_i32 = arith.constant 1 : i32
    %47 = vector.broadcast %c1_i32 : i32 to vector<8x16xi32>
    %48 = arith.andi %46, %47 : vector<8x16xi32>
    %c1_i32_15 = arith.constant 1 : i32
    %49 = vector.broadcast %c1_i32_15 : i32 to vector<8x16xi32>
    %50 = arith.cmpi eq, %48, %49 : vector<8x16xi32>
    %51 = arith.select %50, %43, %29 : vector<8x16xi1>, vector<8x16xf32>
    %52 = arith.select %50, %29, %43 : vector<8x16xi1>, vector<8x16xf32>
    %c2_i32 = arith.constant 2 : i32
    %53 = vector.broadcast %c2_i32 : i32 to vector<8x16xi32>
    %54 = arith.andi %46, %53 : vector<8x16xi32>
    %c2_i32_16 = arith.constant 2 : i32
    %55 = vector.broadcast %c2_i32_16 : i32 to vector<8x16xi32>
    %56 = arith.cmpi eq, %54, %55 : vector<8x16xi32>
    %cst_17 = arith.constant 0.000000e+00 : f32
    %57 = vector.broadcast %cst_17 : f32 to vector<8x16xf32>
    %58 = arith.subf %57, %51 : vector<8x16xf32>
    %59 = arith.select %56, %58, %51 : vector<8x16xi1>, vector<8x16xf32>
    %c1_i32_18 = arith.constant 1 : i32
    %60 = vector.broadcast %c1_i32_18 : i32 to vector<8x16xi32>
    %61 = arith.addi %46, %60 : vector<8x16xi32>
    %c2_i32_19 = arith.constant 2 : i32
    %62 = vector.broadcast %c2_i32_19 : i32 to vector<8x16xi32>
    %63 = arith.andi %61, %62 : vector<8x16xi32>
    %c2_i32_20 = arith.constant 2 : i32
    %64 = vector.broadcast %c2_i32_20 : i32 to vector<8x16xi32>
    %65 = arith.cmpi eq, %63, %64 : vector<8x16xi32>
    %cst_21 = arith.constant 0.000000e+00 : f32
    %66 = vector.broadcast %cst_21 : f32 to vector<8x16xf32>
    %67 = arith.subf %66, %52 : vector<8x16xf32>
    %68 = arith.select %65, %67, %52 : vector<8x16xi1>, vector<8x16xf32>
    %69 = tpu.concatenate %59, %68 in 1 : vector<8x16xf32>, vector<8x16xf32> -> vector<8x32xf32>
    %c0_22 = arith.constant 0 : index
    %c0_23 = arith.constant 0 : index
    %70 = vector.load %arg3[%c0_22, %c0_23] : memref<8x32xf32, #tpu.memory_space<vmem>>, vector<8x32xf32>
    tpu.vector_store %arg3[%c0_22, %c0_23], %69 {strides = array<i32>} : memref<8x32xf32, #tpu.memory_space<vmem>>, vector<8x32xf32>,
    return
  }
  func.func @transform_0(%arg0: i32) -> (i32, i32) {
    %c0_i32 = arith.constant 0 : i32
    %c0_i32_0 = arith.constant 0 : i32
    %c0_i32_1 = arith.constant 0 : i32
    return %c0_i32, %c0_i32_0 : i32, i32
  }
  func.func @transform_1(%arg0: i32) -> (i32, i32) {
    %c0_i32 = arith.constant 0 : i32
    %c0_i32_0 = arith.constant 0 : i32
    return %arg0, %c0_i32 : i32, i32
  }
  func.func @transform_2(%arg0: i32) -> (i32, i32) {
    %c0_i32 = arith.constant 0 : i32
    %c0_i32_0 = arith.constant 0 : i32
    return %arg0, %c0_i32 : i32, i32
  }
}

</mosaic_0001>

<bundles_post_ra>
// kernel: tpu_custom_call.1
= control target key start
LH: loop header
LB: loop body
LE: loop exit
PB: predicated region body
PF: predicated region fallthrough
CT: control target
= control target key end

     0   :  { %v123_v1 = vmov 0   ;;  %s150_s0 = inlined_call_operand.vmem [shape: f32[1,16], index: 0, kind: input, shape index: {}]   ;;  %s151_s1 = inlined_call_operand.vmem [shape: f32[8,1], index: 1, kind: input, shape index: {}]   ;;  %s152_s2 = inlined_call_operand.hbm [shape: f32[8,32], index: 2, kind: output, shape index: {}]  }
   0x1   :  { %v12_v0 = vld [vmem:[%s151_s1] sm:$0xff]  ;;  %95 = vset.pattern.permute.xlu0 %v123_v1 }
   0x2   :  { %7 = vsyncpa [#allocation3], 0  ;;  %16 = vperm.xlu0 %95, %v12_v0   ;;  %v96_v2 = vld [vmem:[%s150_s0] ss:$0 sm:$0xff]  ;;  %s124_s0 = smov 16   ;;  %s125_s1 = smov [#allocation2]  }
   0x3   :  { %s77_s13 = sshll.u32 %s125_s1, 4  ;;  %s79_s16 = sshll.u32 %s152_s2, 4  ;;  %vm68_vm3 = vcmask 130048   ;;  %vm70_vm4 = vcmask 261120   ;;  %s78_s13 = int_to_ptr.vmem [resolvable:$true] %s77_s13  ;;  %s80_s16 = int_to_ptr.hbm [resolvable:$true] %s79_s16 }
  0x74   :  { %v17_v3 = vpop.permute.xlu0 %16 }
  0x75   :  { %v22_v4 = vmul.f32 %v96_v2, %v17_v3 }
  0x77   :  { %v23_v5 = vmul.f32 0.63661975, %v22_v4 }
  0x79   :  { %v24_v6 = vadd.f32 0.5, %v23_v5 }
  0x7b   :  { %v25_v7 = vfloor.f32 %v24_v6 }
  0x7d   :  { %v26_v8 = vmul.f32 1.5703125, %v25_v7  ;;  %v28_v10 = vmul.f32 0.0004837513, %v25_v7  ;;  %v30_v12 = vmul.f32 7.54979e-08, %v25_v7  ;;  %v91_v17 = vcvt.f32.s32 %v25_v7 }
  0x7f   :  { %v27_v9 = vsub.f32 %v22_v4, %v26_v8  ;;  %v50_v22 = vand.u32 3, %v91_v17 }
  0x81   :  { %v29_v11 = vsub.f32 %v27_v9, %v28_v10  ;;  %v59_v29 = vadd.s32 1, %v50_v22  ;;  %v51_v30 = vand.u32 1, %v50_v22  ;;  %v55_v36 = vand.u32 2, %v50_v22 }
  0x83   :  { %v31_v13 = vsub.f32 %v29_v11, %v30_v12  ;;  %v60_v35 = vand.u32 2, %v59_v29  ;;  %vm52_vm0 = vcmp.eq.s32.totalorder %v51_v30, 1  ;;  %vm56_vm2 = vcmp.eq.s32.totalorder %v55_v36, 2 }
  0x85   :  { %v32_v14 = vmul.f32 %v31_v13, %v31_v13  ;;  %vm61_vm1 = vcmp.eq.s32.totalorder %v60_v35, 2 }
  0x87   :  { %v33_v15 = vmul.f32 -0.00019515296, %v32_v14  ;;  %v40_v16 = vmul.f32 2.4433157e-05, %v32_v14  ;;  %v44_v25 = vmul.f32 %v32_v14, %v32_v14  ;;  %v46_v28 = vmul.f32 0.5, %v32_v14 }
  0x89   :  { %v34_v18 = vadd.f32 0.008332161, %v33_v15  ;;  %v89_v19 = vadd.f32 -0.0013887316, %v40_v16 }
  0x8b   :  { %v35_v20 = vmul.f32 %v34_v18, %v32_v14  ;;  %v42_v21 = vmul.f32 %v89_v19, %v32_v14 }
  0x8d   :  { %v88_v23 = vadd.f32 -0.16666655, %v35_v20  ;;  %v43_v24 = vadd.f32 0.041666646, %v42_v21 }
  0x8f   :  { %v37_v26 = vmul.f32 %v88_v23, %v32_v14  ;;  %v45_v27 = vmul.f32 %v44_v25, %v43_v24 }
  0x91   :  { %v38_v31 = vmul.f32 %v37_v26, %v31_v13  ;;  %v47_v32 = vsub.f32 %v45_v27, %v46_v28 }
  0x93   :  { %v39_v33 = vadd.f32 %v38_v31, %v31_v13  ;;  %v48_v34 = vadd.f32 1.0, %v47_v32 }
  0x95   :  { %v54_v37 = vsel %vm52_vm0, %v39_v33, %v48_v34  ;;  %v53_v38 = vsel %vm52_vm0, %v48_v34, %v39_v33 }
  0x96   :  { %v62_v39 = vsub.f32 0.0, %v54_v37  ;;  %v57_v40 = vsub.f32 0.0, %v53_v38 }
  0x98   :  { %v63_v41 = vsel %vm61_vm1, %v62_v39, %v54_v37  ;;  %v58_v42 = vsel %vm56_vm2, %v57_v40, %v53_v38 }
  0x99   :  { %65 = vrot.lane.b32.xlu0 %v63_v41, %s124_s0 }
 0x10b   :  { %v66_v43 = vpop.permute.xlu0 %65 }
 0x10c   :  { %v69_v44 = vsel %vm68_vm3, %v58_v42, %v66_v43 }
 0x10d   :  { %71 = vst.msk [vmem:[#allocation2] sm:$0xff] %vm70_vm4, %v69_v44 }
 0x10e   :  { %82 = dma.vmem_to_hbm [thread:$0]  %s78_s13, 128, %s80_s16, [#allocation3]  }
 0x10f   :  { %121 = dma.done.wait [#allocation3], 128  }
 0x110   :  { %122 = vsyncadd [#allocation3], 4294967168 }
 0x111   :  { %87 = vsyncpa [#allocation3], 1 }

</bundles_post_ra>
